<compile_context>
chip_gen: v7x
topology: tpu7x:2x2x1
jax: 0.10.0
libtpu: 0.0.40
codegen_flags: <defaults>
</compile_context>

<pallas_src>
import functools

import jax
import jax.numpy as jnp
import numpy as np
from jax.experimental import pallas as pl
from jax.experimental.pallas import tpu as pltpu

LANE = 128  # classify weight band / logits output padded to full lane width


# ---------------------------------------------------------------------------
# One-time prep (outside the per-call hot path)
# ---------------------------------------------------------------------------
def prepare_graph(A, lw):
    """Per-graph prep: exact-f32 right-norm denominator, bf16 A, (1,N) lw.

    Note: rows with zero in-degree get inv_deg = 0 (they contribute no
    aggregated message) instead of the NaN a literal division would give;
    the test graph has forced self-loops so deg > 0 everywhere.
    """
    A = A.astype(jnp.float32)
    deg = jnp.sum(A, axis=1, keepdims=True)                  # (N, 1) f32, exact
    inv_deg = jnp.where(deg > 0.0, 1.0 / deg, 0.0).astype(jnp.float32)
    a_bf16 = A.astype(jnp.bfloat16)                          # bf16 MXU operand
    lw_t = lw.reshape(1, -1).astype(jnp.float32)             # (1, N) readout row
    return a_bf16, inv_deg, lw_t


def pack_param_slabs(w1, b1, w2, b2, wd, bd, wc, bc):
    """Pack pre-transposed (in,out) weights and (1,out) biases into 2 slabs.

    Column bands:  fun1 -> [0:h1], fun2 -> [h1:h1+h2], dense1 -> [h1+h2:+h3],
    classify -> [LANE:2*LANE] (lane-aligned and zero-padded to 128 columns so
    the kernel's final logits store is a full-lane vst).
    """
    in_f, h1 = w1.shape
    _, h2 = w2.shape
    _, h3 = wd.shape
    num_classes = wc.shape[1]
    assert h1 + h2 + h3 <= LANE and num_classes <= LANE

    max_in = max(in_f, h1, h2, h3)
    rows = -(-max_in // 8) * 8                               # sublane multiple

    w_slab = jnp.zeros((rows, 2 * LANE), jnp.float32)
    b_slab = jnp.zeros((1, 2 * LANE), jnp.float32)
    c = 0
    w_slab = w_slab.at[:in_f, c:c + h1].set(w1)
    b_slab = b_slab.at[:, c:c + h1].set(b1)
    c += h1
    w_slab = w_slab.at[:h1, c:c + h2].set(w2)
    b_slab = b_slab.at[:, c:c + h2].set(b2)
    c += h2
    w_slab = w_slab.at[:h2, c:c + h3].set(wd)
    b_slab = b_slab.at[:, c:c + h3].set(bd)
    w_slab = w_slab.at[:h3, LANE:LANE + num_classes].set(wc)
    b_slab = b_slab.at[:, LANE:LANE + num_classes].set(bc)
    return w_slab, b_slab


# ---------------------------------------------------------------------------
# Kernel
# ---------------------------------------------------------------------------
def gin_kernel(a_ref, x_ref, invdeg_ref, lwt_ref, w_ref, b_ref, out_ref, *, dims):
    in_f, h1, h2, h3 = dims

    a = a_ref[...]                         # (N, N) bf16 dst x src (raw weights)
    x = x_ref[...]                         # (N, in_f) f32
    inv_deg = invdeg_ref[...]              # (N, 1) f32, exact 1/deg (0 if deg==0)

    # --- conv1 = GINConv(fun1, 'sum'), eps = 0 (right-norm folded in) -------
    agg1 = jnp.dot(a, x.astype(jnp.bfloat16),
                   preferred_element_type=jnp.float32) * inv_deg
    h = x + agg1
    w1 = w_ref[0:in_f, 0:h1]
    b1 = b_ref[:, 0:h1]
    h = jnp.maximum(jnp.dot(h, w1, preferred_element_type=jnp.float32) + b1, 0.0)
    # F.relu; dropout1 = identity (eval)

    # --- conv2 = GINConv(fun2, 'sum') ----------------------------------------
    agg2 = jnp.dot(a, h.astype(jnp.bfloat16),
                   preferred_element_type=jnp.float32) * inv_deg
    h2v = h + agg2
    w2 = w_ref[0:h1, h1:h1 + h2]
    b2 = b_ref[:, h1:h1 + h2]
    h2v = jnp.maximum(jnp.dot(h2v, w2, preferred_element_type=jnp.float32) + b2, 0.0)
    # F.relu; dropout2 = identity (eval)

    # --- dgl.mean_nodes(g, 'h', 'lw'): weighted mean as (1,N)@(N,F) on MXU ---
    lwt = lwt_ref[...]                     # (1, N)
    lw_sum = jnp.sum(lwt, axis=1, keepdims=True)             # (1, 1)
    hg = (jnp.dot(lwt, h2v, preferred_element_type=jnp.float32)
          * pl.reciprocal(lw_sum, approx=True))              # EUP slot, ~free

    # --- dense1 + relu (dropout3 identity) -----------------------------------
    wd = w_ref[0:h2, h1 + h2:h1 + h2 + h3]
    bd = b_ref[:, h1 + h2:h1 + h2 + h3]
    o1 = jnp.maximum(jnp.dot(hg, wd, preferred_element_type=jnp.float32) + bd, 0.0)

    # --- classify: lane-aligned padded band -> unmasked full-lane store ------
    wc = w_ref[0:h3, LANE:2 * LANE]
    bc = b_ref[:, LANE:2 * LANE]
    out_ref[...] = jnp.dot(o1, wc, preferred_element_type=jnp.float32) + bc


# ---------------------------------------------------------------------------
# Hot path: exactly one pallas_call, nothing else
# ---------------------------------------------------------------------------
@functools.partial(jax.jit, static_argnames=("dims",))
def gin_forward(a_bf16, x, inv_deg, lw_t, w_slab, b_slab, *, dims):
    in_f, h1, h2, h3 = dims
    N = a_bf16.shape[0]

    flops = (2 * N * N * (in_f + h1)            # two message-passing matmuls
             + 2 * N * (in_f * h1 + h1 * h2)    # fun1, fun2
             + 2 * N * h2                       # weighted-mean readout
             + 2 * h2 * h3 + 2 * h3 * LANE)     # dense1, classify
    bytes_accessed = (a_bf16.size * 2 + x.size * 4 + inv_deg.size * 4
                      + lw_t.size * 4 + w_slab.size * 4 + b_slab.size * 4
                      + LANE * 4)

    vmem = pl.BlockSpec(memory_space=pltpu.MemorySpace.VMEM)
    kernel = functools.partial(gin_kernel, dims=dims)
    return pl.pallas_call(
        kernel,
        out_shape=jax.ShapeDtypeStruct((1, LANE), jnp.float32),
        in_specs=[vmem] * 6,
        out_specs=vmem,
        cost_estimate=pl.CostEstimate(flops=flops, transcendentals=1,
                                      bytes_accessed=bytes_accessed),
    )(a_bf16, x, inv_deg, lw_t, w_slab, b_slab)


# ---------------------------------------------------------------------------
# Pure-JAX f32 reference (original module semantics)
# ---------------------------------------------------------------------------
def gin_forward_ref(A, X, lw, params):
    w1, b1, w2, b2, wd, bd, wc, bc = params
    a_norm = A / jnp.sum(A, axis=1, keepdims=True)
    h = jnp.maximum((X + a_norm @ X) @ w1 + b1, 0.0)
    h2 = jnp.maximum((h + a_norm @ h) @ w2 + b2, 0.0)
    hg = jnp.sum(h2 * lw, axis=0, keepdims=True) / jnp.sum(lw)
    o1 = jnp.maximum(hg @ wd + bd, 0.0)
    return o1 @ wc + bc


def make_linear(key, fan_in, fan_out):
    """PyTorch-Linear-style init; returns W^T (in,out) and b (1,out)."""
    kw, kb = jax.random.split(key)
    bound = 1.0 / np.sqrt(fan_in)
    w_t = jax.random.uniform(kw, (fan_in, fan_out), jnp.float32, -bound, bound)
    b = jax.random.uniform(kb, (1, fan_out), jnp.float32, -bound, bound)
    return w_t, b


if __name__ == "__main__":
    # Small, deterministic synthetic problem (single graph).
    N = 64
    in_feats = 16
    h1_feats = 32
    h2_feats = 32
    h3_feats = 16
    num_classes = 3
    dims = (in_feats, h1_feats, h2_feats, h3_feats)

    key = jax.random.PRNGKey(0)
    k_a, k_m, k_x, k_lw, k1, k2, k3, k4 = jax.random.split(key, 8)

    # Dense weighted adjacency: random sparsity, self-loops guarantee deg > 0.
    mask = (jax.random.uniform(k_m, (N, N)) < 0.3).astype(jnp.float32)
    weights = jax.random.uniform(k_a, (N, N), jnp.float32, 0.1, 1.0)
    A = mask * weights + jnp.eye(N, dtype=jnp.float32) * 0.5   # (N, N) dst x src

    X = jax.random.normal(k_x, (N, in_feats), jnp.float32)
    lw = jax.random.uniform(k_lw, (N, 1), jnp.float32, 0.5, 1.5)  # g.ndata['lw']

    w1, b1 = make_linear(k1, in_feats, h1_feats)     # fun1
    w2, b2 = make_linear(k2, h1_feats, h2_feats)     # fun2
    wd, bd = make_linear(k3, h2_feats, h3_feats)     # dense1
    wc, bc = make_linear(k4, h3_feats, num_classes)  # classify
    params = (w1, b1, w2, b2, wd, bd, wc, bc)

    # One-time prep: bf16 A, exact-f32 inv_deg, (1,N) lw, packed param slabs.
    a_bf16, inv_deg, lw_t = prepare_graph(A, lw)
    w_slab, b_slab = pack_param_slabs(*params)

    out_padded = gin_forward(a_bf16, X, inv_deg, lw_t, w_slab, b_slab, dims=dims)
    out_padded = jax.block_until_ready(out_padded)
    out = np.asarray(out_padded)[:, :num_classes]
    assert out.shape == (1, num_classes)

    # Tolerance accounts for bf16 MXU operands (message-passing matmuls) and
    # the approx (EUP) reciprocal of sum(lw) vs. the pure-f32 reference.
    ref = np.asarray(gin_forward_ref(A, X, lw, params))
    np.testing.assert_allclose(out, ref, rtol=3e-2, atol=3e-2)

    print("KERNEL_OK")
</pallas_src>

<mosaic_0001>
module attributes {stable_mosaic.version = 11 : i64} {
  func.func @gin_kernel(%arg0: memref<64x64xbf16, #tpu.memory_space<vmem>>, %arg1: memref<64x16xf32, #tpu.memory_space<vmem>>, %arg2: memref<64x1xf32, #tpu.memory_space<vmem>>, %arg3: memref<1x64xf32, #tpu.memory_space<vmem>>, %arg4: memref<32x256xf32, #tpu.memory_space<vmem>>, %arg5: memref<1x256xf32, #tpu.memory_space<vmem>>, %arg6: memref<1x128xf32, #tpu.memory_space<vmem>>) attributes {dimension_semantics = [], scalar_prefetch = 0 : i64, scratch_operands = 0 : i64, tpu.core_type = #tpu.core_type<tc>} {
    %c0 = arith.constant 0 : index
    %c0_0 = arith.constant 0 : index
    %0 = vector.load %arg0[%c0, %c0_0] : memref<64x64xbf16, #tpu.memory_space<vmem>>, vector<64x64xbf16>
    %c0_1 = arith.constant 0 : index
    %c0_2 = arith.constant 0 : index
    %1 = vector.load %arg1[%c0_1, %c0_2] : memref<64x16xf32, #tpu.memory_space<vmem>>, vector<64x16xf32>
    %c0_3 = arith.constant 0 : index
    %c0_4 = arith.constant 0 : index
    %2 = vector.load %arg2[%c0_3, %c0_4] : memref<64x1xf32, #tpu.memory_space<vmem>>, vector<64x1xf32>
    %3 = arith.truncf %1 : vector<64x16xf32> to vector<64x16xbf16>
    %cst = arith.constant dense<0.000000e+00> : vector<64x16xf32>
    %4 = tpu.matmul %0, %3, %cst {dimension_numbers = #tpu.dot_dimension_numbers<[1], [0], [0], [1], [0, 0, 1, 1], [], []>} : vector<64x64xbf16>, vector<64x16xbf16>, vector<64x16xf32> -> vector<64x16xf32>
    %5 = vector.broadcast %2 : vector<64x1xf32> to vector<64x16xf32>
    %6 = arith.mulf %4, %5 : vector<64x16xf32>
    %7 = arith.addf %1, %6 : vector<64x16xf32>
    %c0_5 = arith.constant 0 : index
    %c0_6 = arith.constant 0 : index
    %8 = vector.load %arg4[%c0_5, %c0_6] : memref<32x256xf32, #tpu.memory_space<vmem>>, vector<16x32xf32>
    %c0_7 = arith.constant 0 : index
    %c0_8 = arith.constant 0 : index
    %9 = vector.load %arg5[%c0_7, %c0_8] : memref<1x256xf32, #tpu.memory_space<vmem>>, vector<1x32xf32>
    %cst_9 = arith.constant dense<0.000000e+00> : vector<64x32xf32>
    %10 = tpu.matmul %7, %8, %cst_9 {dimension_numbers = #tpu.dot_dimension_numbers<[1], [0], [0], [1], [0, 0, 1, 1], [], []>} : vector<64x16xf32>, vector<16x32xf32>, vector<64x32xf32> -> vector<64x32xf32>
    %11 = vector.broadcast %9 : vector<1x32xf32> to vector<64x32xf32>
    %12 = arith.addf %10, %11 : vector<64x32xf32>
    %cst_10 = arith.constant 0.000000e+00 : f32
    %13 = vector.broadcast %cst_10 : f32 to vector<64x32xf32>
    %14 = arith.maximumf %12, %13 : vector<64x32xf32>
    %15 = arith.truncf %14 : vector<64x32xf32> to vector<64x32xbf16>
    %cst_11 = arith.constant dense<0.000000e+00> : vector<64x32xf32>
    %16 = tpu.matmul %0, %15, %cst_11 {dimension_numbers = #tpu.dot_dimension_numbers<[1], [0], [0], [1], [0, 0, 1, 1], [], []>} : vector<64x64xbf16>, vector<64x32xbf16>, vector<64x32xf32> -> vector<64x32xf32>
    %17 = vector.broadcast %2 : vector<64x1xf32> to vector<64x32xf32>
    %18 = arith.mulf %16, %17 : vector<64x32xf32>
    %19 = arith.addf %14, %18 : vector<64x32xf32>
    %c0_12 = arith.constant 0 : index
    %c32 = arith.constant 32 : index
    %20 = vector.load %arg4[%c0_12, %c32] : memref<32x256xf32, #tpu.memory_space<vmem>>, vector<32x32xf32>
    %c0_13 = arith.constant 0 : index
    %c32_14 = arith.constant 32 : index
    %21 = vector.load %arg5[%c0_13, %c32_14] : memref<1x256xf32, #tpu.memory_space<vmem>>, vector<1x32xf32>
    %cst_15 = arith.constant dense<0.000000e+00> : vector<64x32xf32>
    %22 = tpu.matmul %19, %20, %cst_15 {dimension_numbers = #tpu.dot_dimension_numbers<[1], [0], [0], [1], [0, 0, 1, 1], [], []>} : vector<64x32xf32>, vector<32x32xf32>, vector<64x32xf32> -> vector<64x32xf32>
    %23 = vector.broadcast %21 : vector<1x32xf32> to vector<64x32xf32>
    %24 = arith.addf %22, %23 : vector<64x32xf32>
    %cst_16 = arith.constant 0.000000e+00 : f32
    %25 = vector.broadcast %cst_16 : f32 to vector<64x32xf32>
    %26 = arith.maximumf %24, %25 : vector<64x32xf32>
    %c0_17 = arith.constant 0 : index
    %c0_18 = arith.constant 0 : index
    %27 = vector.load %arg3[%c0_17, %c0_18] : memref<1x64xf32, #tpu.memory_space<vmem>>, vector<1x64xf32>
    %cst_19 = arith.constant dense<0.000000e+00> : vector<1xf32>
    %28 = vector.multi_reduction <add>, %27, %cst_19 [1] : vector<1x64xf32> to vector<1xf32>
    %29 = vector.shape_cast %28 : vector<1xf32> to vector<1x1xf32>
    %cst_20 = arith.constant dense<0.000000e+00> : vector<1x32xf32>
    %30 = tpu.matmul %27, %26, %cst_20 {dimension_numbers = #tpu.dot_dimension_numbers<[1], [0], [0], [1], [0, 0, 1, 1], [], []>} : vector<1x64xf32>, vector<64x32xf32>, vector<1x32xf32> -> vector<1x32xf32>
    %31 = tpu.reciprocal %29 {approx = true} : vector<1x1xf32> -> vector<1x1xf32>
    %32 = vector.broadcast %31 : vector<1x1xf32> to vector<1x32xf32>
    %33 = arith.mulf %30, %32 : vector<1x32xf32>
    %c0_21 = arith.constant 0 : index
    %c64 = arith.constant 64 : index
    %34 = vector.load %arg4[%c0_21, %c64] : memref<32x256xf32, #tpu.memory_space<vmem>>, vector<32x16xf32>
    %c0_22 = arith.constant 0 : index
    %c64_23 = arith.constant 64 : index
    %35 = vector.load %arg5[%c0_22, %c64_23] : memref<1x256xf32, #tpu.memory_space<vmem>>, vector<1x16xf32>
    %cst_24 = arith.constant dense<0.000000e+00> : vector<1x16xf32>
    %36 = tpu.matmul %33, %34, %cst_24 {dimension_numbers = #tpu.dot_dimension_numbers<[1], [0], [0], [1], [0, 0, 1, 1], [], []>} : vector<1x32xf32>, vector<32x16xf32>, vector<1x16xf32> -> vector<1x16xf32>
    %37 = arith.addf %36, %35 : vector<1x16xf32>
    %cst_25 = arith.constant 0.000000e+00 : f32
    %38 = vector.broadcast %cst_25 : f32 to vector<1x16xf32>
    %39 = arith.maximumf %37, %38 : vector<1x16xf32>
    %c0_26 = arith.constant 0 : index
    %c128 = arith.constant 128 : index
    %40 = vector.load %arg4[%c0_26, %c128] : memref<32x256xf32, #tpu.memory_space<vmem>>, vector<16x128xf32>
    %c0_27 = arith.constant 0 : index
    %c128_28 = arith.constant 128 : index
    %41 = vector.load %arg5[%c0_27, %c128_28] : memref<1x256xf32, #tpu.memory_space<vmem>>, vector<1x128xf32>
    %cst_29 = arith.constant dense<0.000000e+00> : vector<1x128xf32>
    %42 = tpu.matmul %39, %40, %cst_29 {dimension_numbers = #tpu.dot_dimension_numbers<[1], [0], [0], [1], [0, 0, 1, 1], [], []>} : vector<1x16xf32>, vector<16x128xf32>, vector<1x128xf32> -> vector<1x128xf32>
    %43 = arith.addf %42, %41 : vector<1x128xf32>
    %c0_30 = arith.constant 0 : index
    %c0_31 = arith.constant 0 : index
    %44 = vector.load %arg6[%c0_30, %c0_31] : memref<1x128xf32, #tpu.memory_space<vmem>>, vector<1x128xf32>
    tpu.vector_store %arg6[%c0_30, %c0_31], %43 {strides = array<i32>} : memref<1x128xf32, #tpu.memory_space<vmem>>, vector<1x128xf32>,
    return
  }
}

</mosaic_0001>

<bundles_post_ra>
// kernel: gin_forward.1
= control target key start
LH: loop header
LB: loop body
LE: loop exit
PB: predicated region body
PF: predicated region fallthrough
CT: control target
= control target key end

     0   :  { %v1144_v5 = vmov 0   ;;  %vm73_vm0 = vcmask 523264   ;;  %s1425_s0 = inlined_call_operand.vmem [shape: bf16[64,64], index: 0, kind: input, shape index: {}]   ;;  %s1426_s1 = inlined_call_operand.vmem [shape: f32[64,16], index: 1, kind: input, shape index: {}]   ;;  %s1427_s2 = inlined_call_operand.vmem [shape: f32[64,1], index: 2, kind: input, shape index: {}]   ;;  %s1428_s3 = inlined_call_operand.vmem [shape: f32[1,64], index: 3, kind: input, shape index: {}]   ;;  %s1429_s4 = inlined_call_operand.vmem [shape: f32[32,256], index: 4, kind: input, shape index: {}]   ;;  %s1430_s5 = inlined_call_operand.vmem [shape: f32[1,256], index: 5, kind: input, shape index: {}]   ;;  %s1431_s6 = inlined_call_operand.hbm [shape: f32[1,128], index: 6, kind: output, shape index: {}]  }
   0x1   :  { %v1189_v0 = vld [vmem:[%s1426_s1] sm:$0xff]  ;;  %v1194_v1 = vld [vmem:[%s1426_s1 + $0x8] sm:$0xff]  ;;  %v1199_v2 = vld [vmem:[%s1426_s1 + $0x10] sm:$0xff]  ;;  %1092 = vset.pattern.permute.xlu0 %v1144_v5  ;;  %1093 = vset.pattern.permute.xlu1 %v1144_v5 }
   0x2   :  { %v49_v3 = vpack.c.bf16 %v1194_v1, %v1189_v0  ;;  %v1206_v4 = vld [vmem:[%s1426_s1 + $0x18] sm:$0xff]  ;;  %v1213_v7 = vld [vmem:[%s1426_s1 + $0x20] sm:$0xff]  ;;  %v1218_v8 = vld [vmem:[%s1426_s1 + $0x28] sm:$0xff] }
   0x3   :  { %v50_v6 = vpack.c.bf16 %v1206_v4, %v1199_v2  ;;  %v1223_v9 = vld [vmem:[%s1425_s0] sm:$0xff]   ;;  %v51_v10 = vpack.c.bf16 %v1218_v8, %v1213_v7  ;;  %v1230_v11 = vld [vmem:[%s1426_s1 + $0x30] sm:$0xff]  ;;  %v1237_v12 = vld [vmem:[%s1426_s1 + $0x38] sm:$0xff] }
   0x4   :  { %947 = vmatprep.subr.bf16.mxu0 %v49_v3  ;;  %955 = vmatprep.mubr.msk.bf16.mxu0 %vm73_vm0, %v1223_v9  ;;  %v41_v13 = vld [vmem:[%s1427_s2] sm:$0xff]  ;;  %v43_v14 = vld [vmem:[%s1427_s2 + $0x10] sm:$0xff]  ;;  %v42_v15 = vld [vmem:[%s1427_s2 + $0x8] sm:$0xff]  ;;  %v52_v16 = vpack.c.bf16 %v1237_v12, %v1230_v11 }
   0x5   :  { %948 = vmatpush3.bf16.msra.mxu0 %v49_v3  ;;  %153 = vperm.xlu0 %1092, %v41_v13   ;;  %v44_v17 = vld [vmem:[%s1427_s2 + $0x18] sm:$0xff] }
   0x6   :  { %949 = vmatprep.subr.bf16.mxu0 %v50_v6  ;;  %163 = vperm.xlu1 %1093, %v43_v14  }
   0x9   :  { %950 = vmatpush3.bf16.msra.mxu0 %v50_v6 }
   0xa   :  { %951 = vmatprep.subr.bf16.mxu0 %v51_v10 }
   0xb   :  { %11 = vsyncpa [#allocation3], 0  ;;  %158 = vperm.xlu0 %1092, %v42_v15   ;;  %168 = vperm.xlu1 %1093, %v44_v17   ;;  %v45_v18 = vld [vmem:[%s1427_s2 + $0x20] sm:$0xff]  ;;  %v46_v19 = vld [vmem:[%s1427_s2 + $0x28] sm:$0xff]  ;;  %vm216_vm1 = vcmask 130048   ;;  %s1145_s18 = smov 96  }
   0xc   :  { %v1262_v20 = vld [vmem:[%s1425_s0 + $0x8] sm:$0xff]   ;;  %v1267_v21 = vld [vmem:[%s1425_s0 + $0x10] sm:$0xff]   ;;  %v48_v23 = vld [vmem:[%s1427_s2 + $0x38] sm:$0xff]  ;;  %vm462_vm2 = vcmask 261120   ;;  %vm1147_vm3 = vmmov 0   ;;  %vm601_vm4 = vcmask 516096  }
   0xd   :  { %952 = vmatpush3.bf16.msra.mxu0 %v51_v10  ;;  %v47_v22 = vld [vmem:[%s1427_s2 + $0x30] sm:$0xff]  ;;  %v1282_v24 = vld [vmem:[%s1425_s0 + $0x18] sm:$0xff]   ;;  %v207_v25 = vld [vmem:[%s1429_s4] sm:$0xff]  ;;  %s1149_s22 = smov 64  }
   0xe   :  { %953 = vmatprep.subr.bf16.mxu0 %v52_v16  ;;  %v208_v26 = vld [vmem:[%s1429_s4 + $0x10] sm:$0xff]  ;;  %v441_v61 = vld [vmem:[%s1429_s4 + $0x20] sm:$0xff] }
   0xf   :  { %173 = vperm.xlu0 %1092, %v45_v18   ;;  %178 = vperm.xlu1 %1093, %v46_v19   ;;  %v1052_v27 = vpack.c.bf16 %v208_v26, %v207_v25  ;;  %v1334_v60 = vpack.i.bf16 %v208_v26, %v207_v25  ;;  %v442_v62 = vld [vmem:[%s1429_s4 + $0x30] sm:$0xff] }
  0x10   :  { %v1342_v63 = vpack.i.bf16 %v442_v62, %v441_v61 }
  0x11   :  { %954 = vmatpush3.bf16.msra.mxu0 %v52_v16  ;;  %1053 = vmatprep.subr.bf16.mxu1 %v1052_v27 }
  0x12   :  { %1055 = vmatpush3.bf16.msra.mxu1 %v1052_v27 }
  0x13   :  { %183 = vperm.xlu0 %1092, %v47_v22   ;;  %188 = vperm.xlu1 %1093, %v48_v23  }
  0x14   :  { %956 = vmatmul.mubr.msk.bf16.vlgmr.msra.gmra.mrb[0].mxu0 %vm73_vm0, %v1262_v20 }
  0x15   :  { %959 = vmatprep.mubr.msk.bf16.mxu0 %vm73_vm0, %v1267_v21 }
  0x17   :  { %1095 = vrot.lane.b32.xlu0 %v1334_v60, %s1145_s18  ;;  %1100 = vrot.lane.b32.xlu1 %v1342_v63, %s1145_s18 }
  0x1c   :  { %960 = vmatmul.mubr.msk.bf16.gmra.mrb[4].mxu0 %vm73_vm0, %v1282_v24 }
  0x84   :  { %v1292_v28 = vpop.permute.xlu0 %153 }
  0x85   :  { %v1294_v29 = vpop.permute.xlu1 %163 }
  0x8a   :  { %v1296_v30 = vpop.permute.xlu0 %158  ;;  %v1298_v32 = vpop.permute.xlu1 %168 }
  0x8e   :  { %v1302_v38 = vpop.permute.xlu0 %173  ;;  %v1309_v43 = vpop.permute.xlu1 %178 }
  0x92   :  { %v1314_v47 = vpop.permute.xlu0 %183  ;;  %v1322_v55 = vpop.permute.xlu1 %188 }
  0xe7   :  { %v957_v31 = vpop.f32.mrb[0].mxu0 }
  0xe8   :  { %v120_v33 = vpop.f32.mrb[1].mxu0  ;;  %v193_v36 = vmul.f32 %v957_v31, %v1294_v29 }
  0xe9   :  { %v191_v34 = vmul.f32 %v1292_v28, %v120_v33  ;;  %v958_v35 = vpop.f32.mrb[2].mxu0 }
  0xea   :  { %v123_v37 = vpop.f32.mrb[3].mxu0  ;;  %v194_v41 = vmul.f32 %v958_v35, %v1298_v32  ;;  %v201_v44 = vadd.f32 %v193_v36, %v1199_v2  ;;  %v1096_v36 = vpop.permute.xlu0 %1095 }
  0xeb   :  { %v192_v39 = vmul.f32 %v1296_v30, %v123_v37  ;;  %v199_v40 = vadd.f32 %v191_v34, %v1189_v0  ;;  %v1349_v0 = vld [vmem:[%s1430_s5] ss:$0 sm:$0xff]  ;;  %v1098_v37 = vunpack.i.h.bf16 %v1096_v36 }
  0xec   :  { %v202_v48 = vadd.f32 %v194_v41, %v1206_v4  ;;  %459 = vrot.lane.b32.xlu0 %v1349_v0, %s1145_s18 }
  0xed   :  { %v200_v42 = vadd.f32 %v192_v39, %v1194_v1  ;;  %967 = vmatprep.mubr.msk.f32.mxu1 %vm216_vm1, %v199_v40  ;;  %v1097_v39 = vunpack.i.l.bf16 %v1096_v36  ;;  %v1101_v40 = vpop.permute.xlu1 %1100 }
  0xee   :  { %v1103_v41 = vunpack.i.h.bf16 %v1101_v40 }
  0xef   :  { %v961_v45 = vpop.f32.mrb[4].mxu0  ;;  %968 = vmatmul.mubr.msk.f32.vlgmr.msra.gmra.mrb[0].mxu1 %vm216_vm1, %v200_v42  ;;  %v1102_v42 = vunpack.i.l.bf16 %v1101_v40 }
  0xf0   :  { %v136_v46 = vpop.f32.mrb[5].mxu0  ;;  %970 = vmatprep.mubr.msk.f32.mxu1 %vm216_vm1, %v201_v44  ;;  %v197_v51 = vmul.f32 %v961_v45, %v1314_v47  ;;  %v1056_v44 = vpack.c.bf16 %v1098_v37, %v1097_v39  ;;  %1105 = vrot.lane.b32.xlu0 %v1334_v60, %s1149_s22 }
  0xf1   :  { %v195_v49 = vmul.f32 %v1302_v38, %v136_v46  ;;  %v962_v50 = vpop.f32.mrb[6].mxu0  ;;  %v1060_v45 = vpack.c.bf16 %v1103_v41, %v1102_v42 }
  0xf2   :  { %v139_v52 = vpop.f32.mrb[7].mxu0  ;;  %v198_v56 = vmul.f32 %v962_v50, %v1322_v55  ;;  %v205_v58 = vadd.f32 %v197_v51, %v1230_v11  ;;  %1057 = vmatprep.subr.bf16.mxu0 %v1056_v44 }
  0xf3   :  { %v203_v53 = vadd.f32 %v195_v49, %v1213_v7  ;;  %v196_v54 = vmul.f32 %v1309_v43, %v139_v52  ;;  %971 = vmatmul.mubr.msk.f32.gmra.mrb[2].mxu1 %vm216_vm1, %v202_v48  ;;  %1059 = vmatpush3.bf16.msra.mxu0 %v1056_v44 }
  0xf4   :  { %v206_v59 = vadd.f32 %v198_v56, %v1237_v12  ;;  %1061 = vmatprep.subr.bf16.mxu0 %v1060_v45  ;;  %1110 = vrot.lane.b32.xlu0 %v1342_v63, %s1149_s22 }
  0xf5   :  { %v204_v57 = vadd.f32 %v196_v54, %v1218_v8  ;;  %973 = vmatprep.mubr.msk.f32.mxu1 %vm216_vm1, %v203_v53 }
  0xf7   :  { %974 = vmatmul.mubr.msk.f32.gmra.mrb[4].mxu1 %vm216_vm1, %v204_v57  ;;  %1063 = vmatpush3.bf16.msra.mxu0 %v1060_v45 }
  0xf8   :  { %976 = vmatprep.mubr.msk.f32.mxu1 %vm216_vm1, %v205_v58  ;;  %692 = vrot.lane.b32.xlu0 %v1349_v0, %s1149_s22 }
  0xfb   :  { %977 = vmatmul.mubr.msk.f32.gmra.mrb[6].mxu1 %vm216_vm1, %v206_v59 }
  0xfc   :  { %987 = vmatprep.mubr.msk.bf16.mxu1 %vm73_vm0, %v1223_v9 }
 0x1c2   :  { %v969_v1 = vpop.f32.mrb[0].mxu1 }
 0x1c3   :  { %v313_v2 = vadd.f32 %v969_v1, %v1349_v0  ;;  %v307_v3 = vpop.f32.mrb[1].mxu1 }
 0x1c4   :  { %v308_v4 = vadd.f32 %v1349_v0, %v307_v3 }
 0x1c5   :  { %v347_v5 = vmax.f32 %v313_v2, 0.0 }
 0x1c6   :  { %v346_v6 = vmax.f32 %v308_v4, 0.0  ;;  %v972_v7 = vpop.f32.mrb[2].mxu1  ;;  %v460_v4 = vpop.permute.xlu0 %459 }
 0x1c7   :  { %v323_v8 = vadd.f32 %v972_v7, %v1349_v0  ;;  %v317_v9 = vpop.f32.mrb[3].mxu1 }
 0x1c8   :  { %v354_v10 = vpack.c.bf16 %v347_v5, %v346_v6  ;;  %v318_v11 = vadd.f32 %v1349_v0, %v317_v9 }
 0x1c9   :  { %v349_v12 = vmax.f32 %v323_v8, 0.0 }
 0x1ca   :  { %v348_v13 = vmax.f32 %v318_v11, 0.0  ;;  %v975_v14 = vpop.f32.mrb[4].mxu1  ;;  %979 = vmatprep.subr.bf16.mxu1 %v354_v10 }
 0x1cb   :  { %v1357_v15 = vadd.f32 %v975_v14, %v1349_v0  ;;  %v327_v16 = vpop.f32.mrb[5].mxu1  ;;  %980 = vmatpush3.bf16.msra.mxu1 %v354_v10 }
 0x1cc   :  { %v355_v17 = vpack.c.bf16 %v349_v12, %v348_v13  ;;  %v328_v18 = vadd.f32 %v1349_v0, %v327_v16 }
 0x1cd   :  { %v351_v19 = vmax.f32 %v1357_v15, 0.0 }
 0x1ce   :  { %v350_v22 = vmax.f32 %v328_v18, 0.0  ;;  %v978_v23 = vpop.f32.mrb[6].mxu1  ;;  %981 = vmatprep.subr.bf16.mxu1 %v355_v17 }
 0x1cf   :  { %v343_v25 = vadd.f32 %v978_v23, %v1349_v0  ;;  %v337_v26 = vpop.f32.mrb[7].mxu1  ;;  %982 = vmatpush3.bf16.msra.mxu1 %v355_v17  ;;  %v1106_v23 = vpop.permute.xlu0 %1105 }
 0x1d0   :  { %v356_v27 = vpack.c.bf16 %v351_v19, %v350_v22  ;;  %v338_v31 = vadd.f32 %v1349_v0, %v337_v26  ;;  %v1108_v37 = vunpack.i.h.bf16 %v1106_v23  ;;  %v1107_v39 = vunpack.i.l.bf16 %v1106_v23 }
 0x1d1   :  { %v353_v33 = vmax.f32 %v343_v25, 0.0 }
 0x1d2   :  { %v352_v34 = vmax.f32 %v338_v31, 0.0  ;;  %983 = vmatprep.subr.bf16.mxu1 %v356_v27  ;;  %v1077_v42 = vpack.c.bf16 %v1108_v37, %v1107_v39 }
 0x1d3   :  { %984 = vmatpush3.bf16.msra.mxu1 %v356_v27  ;;  %v1111_v40 = vpop.permute.xlu0 %1110 }
 0x1d4   :  { %v357_v35 = vpack.c.bf16 %v353_v33, %v352_v34  ;;  %v1113_v44 = vunpack.i.h.bf16 %v1111_v40  ;;  %v1112_v45 = vunpack.i.l.bf16 %v1111_v40 }
 0x1d6   :  { %985 = vmatprep.subr.bf16.mxu1 %v357_v35 }
 0x1d7   :  { %986 = vmatpush3.bf16.msra.mxu1 %v357_v35 }
 0x1da   :  { %988 = vmatmul.mubr.msk.bf16.vlgmr.msra.gmra.mrb[8].mxu1 %vm73_vm0, %v1262_v20 }
 0x1db   :  { %991 = vmatprep.mubr.msk.bf16.mxu1 %vm73_vm0, %v1267_v21 }
 0x1e2   :  { %992 = vmatmul.mubr.msk.bf16.gmra.mrb[12].mxu1 %vm73_vm0, %v1282_v24 }
 0x2ad   :  { %v989_v46 = vpop.f32.mrb[8].mxu1 }
 0x2ae   :  { %v392_v48 = vpop.f32.mrb[9].mxu1  ;;  %v425_v51 = vmul.f32 %v989_v46, %v1294_v29  ;;  %v1080_v46 = vpack.c.bf16 %v1113_v44, %v1112_v45 }
 0x2af   :  { %v423_v49 = vmul.f32 %v392_v48, %v1292_v28  ;;  %v990_v50 = vpop.f32.mrb[10].mxu1  ;;  %v769_v48 = vld [vmem:[%s1429_s4 + $0x8] sm:$0xff] }
 0x2b0   :  { %v395_v52 = vpop.f32.mrb[11].mxu1  ;;  %v426_v21 = vmul.f32 %v990_v50, %v1298_v32  ;;  %v433_v56 = vadd.f32 %v425_v51, %v348_v13 }
 0x2b1   :  { %v431_v20 = vadd.f32 %v423_v49, %v346_v6  ;;  %v424_v53 = vmul.f32 %v395_v52, %v1296_v30  ;;  %v770_v49 = vld [vmem:[%s1429_s4 + $0x18] sm:$0xff]  ;;  %s1150_s4 = smov [#allocation2]  }
 0x2b2   :  { %v434_v28 = vadd.f32 %v426_v21, %v349_v12  ;;  %v1083_v50 = vpack.c.bf16 %v770_v49, %v769_v48  ;;  %s852_s28 = sshll.u32 %s1150_s4, 4  ;;  %s853_s28 = int_to_ptr.vmem [resolvable:$true] %s852_s28 }
 0x2b3   :  { %v432_v54 = vadd.f32 %v424_v53, %v347_v5  ;;  %1003 = vmatprep.mubr.msk.f32.mxu0 %vm462_vm2, %v431_v20  ;;  %s1120_s29 = scalar_lea.vmem %s853_s28, 16  ;;  %s1124_s30 = scalar_lea.vmem %s853_s28, 32 }
 0x2b4   :  { %p1121_p0 = scmp.ne.s32.totalorder %s853_s28, %s1120_s29  ;;  %p1125_p1 = scmp.lt.s32.totalorder %s853_s28, %s853_s28 }
 0x2b5   :  { %v993_v57 = vpop.f32.mrb[12].mxu1  ;;  %1004 = vmatmul.mubr.msk.f32.vlgmr.msra.gmra.mrb[8].mxu0 %vm462_vm2, %v432_v54  ;;  %v693_v54 = vpop.permute.xlu0 %692  ;;  %p1126_p2 = scmp.lt.s32.totalorder %s1124_s30, %s1120_s29 }
 0x2b6   :  { %v408_v24 = vpop.f32.mrb[13].mxu1  ;;  %1006 = vmatprep.mubr.msk.f32.mxu0 %vm462_vm2, %v433_v56  ;;  %v429_v59 = vmul.f32 %v993_v57, %v1314_v47  ;;  %v1146_v47 = vmov 0.0|0.0  }
 0x2b7   :  { %v427_v29 = vmul.f32 %v408_v24, %v1302_v38  ;;  %v994_v58 = vpop.f32.mrb[14].mxu1  ;;  %1064 = vmatprep.subr.bf16.mxu1 %v1146_v47  ;;  %1082 = vmatprep.subr.bf16.mxu0 %v1146_v47  ;;  %p1127_p3 = por %p1126_p2, %p1125_p1 }
 0x2b8   :  { %v411_v61 = vpop.f32.mrb[15].mxu1  ;;  %v430_v62 = vmul.f32 %v994_v58, %v1322_v55  ;;  %v437_v2 = vadd.f32 %v429_v59, %v352_v34  ;;  %v600_v55 = vld [vmem:[%s1428_s3] sm:$0x1]  ;;  %1084 = vmatpush3.bf16.msra.mxu0 %v1083_v50 }
 0x2b9   :  { %v435_v30 = vadd.f32 %v427_v29, %v350_v22  ;;  %v428_v32 = vmul.f32 %v411_v61, %v1309_v43  ;;  %1007 = vmatmul.mubr.msk.f32.gmra.mrb[10].mxu0 %vm462_vm2, %v434_v28  ;;  %v1148_v43 = vmov 0.0   ;;  %v602_v3 = vsel %vm601_vm4, %v600_v55, 0.0  ;;  %v771_v29 = vld [vmem:[%s1430_s5 + $0x1] sm:$0x1]  ;;  %p1128_p4 = pnand %p1127_p3, %p1121_p0 }
 0x2ba   :  { %v438_v38 = vadd.f32 %v430_v62, %v353_v33  ;;  %1031 = vmatprep.mubr.msk.f32.mxu1 %vm1147_vm3, %v1148_v43  ;;  %603 = vadd.xlane.f32.xlu1 %v602_v3 }
 0x2bb   :  { %v436_v1 = vadd.f32 %v428_v32, %v351_v19  ;;  %1009 = vmatprep.mubr.msk.f32.mxu0 %vm462_vm2, %v435_v30 }
 0x2bd   :  { %1010 = vmatmul.mubr.msk.f32.gmra.mrb[12].mxu0 %vm462_vm2, %v436_v1 }
 0x2be   :  { %1012 = vmatprep.mubr.msk.f32.mxu0 %vm462_vm2, %v437_v2 }
 0x2c1   :  { %1013 = vmatmul.mubr.msk.f32.gmra.mrb[14].mxu0 %vm462_vm2, %v438_v38 }
 0x2c2   :  { %1049 = vmatprep.mubr.msk.f32.mxu0 %vm1147_vm3, %v1148_v43 }
 0x347   :  { %v604_v51 = vpop.xlane.xlu1 %603 }
 0x348   :  { %1118 = vrcp.f32 %v604_v51 }
 0x352   :  { %v1119_v52 = vpop.eup %1118 }
 0x388   :  { %v1005_v5 = vpop.f32.mrb[8].mxu0 }
 0x389   :  { %v559_v6 = vadd.f32 %v1005_v5, %v460_v4  ;;  %v553_v7 = vpop.f32.mrb[9].mxu0 }
 0x38a   :  { %v554_v8 = vadd.f32 %v553_v7, %v460_v4 }
 0x38b   :  { %v593_v9 = vmax.f32 %v559_v6, 0.0 }
 0x38c   :  { %v592_v10 = vmax.f32 %v554_v8, 0.0  ;;  %v1008_v11 = vpop.f32.mrb[10].mxu0 }
 0x38d   :  { %v569_v12 = vadd.f32 %v1008_v11, %v460_v4  ;;  %v563_v13 = vpop.f32.mrb[11].mxu0 }
 0x38e   :  { %v1065_v14 = vpack.c.bf16 %v593_v9, %v592_v10  ;;  %v564_v15 = vadd.f32 %v563_v13, %v460_v4 }
 0x38f   :  { %v595_v16 = vmax.f32 %v569_v12, 0.0 }
 0x390   :  { %v594_v17 = vmax.f32 %v564_v15, 0.0  ;;  %v1011_v60 = vpop.f32.mrb[12].mxu0  ;;  %1066 = vmatpush3.bf16.msra.mxu1 %v1065_v14 }
 0x391   :  { %v579_v18 = vadd.f32 %v1011_v60, %v460_v4  ;;  %v573_v63 = vpop.f32.mrb[13].mxu0  ;;  %1067 = vmatprep.subr.bf16.mxu1 %v1146_v47 }
 0x392   :  { %v1068_v0 = vpack.c.bf16 %v595_v16, %v594_v17  ;;  %v574_v19 = vadd.f32 %v573_v63, %v460_v4 }
 0x393   :  { %v597_v22 = vmax.f32 %v579_v18, 0.0 }
 0x394   :  { %v596_v25 = vmax.f32 %v574_v19, 0.0  ;;  %v1014_v26 = vpop.f32.mrb[14].mxu0  ;;  %1069 = vmatpush3.bf16.msra.mxu1 %v1068_v0 }
 0x395   :  { %v589_v27 = vadd.f32 %v1014_v26, %v460_v4  ;;  %v583_v31 = vpop.f32.mrb[15].mxu0  ;;  %1070 = vmatprep.subr.bf16.mxu1 %v1146_v47 }
 0x396   :  { %v1071_v33 = vpack.c.bf16 %v597_v22, %v596_v25  ;;  %v584_v34 = vadd.f32 %v583_v31, %v460_v4 }
 0x397   :  { %v599_v35 = vmax.f32 %v589_v27, 0.0 }
 0x398   :  { %v598_v36 = vmax.f32 %v584_v34, 0.0  ;;  %1072 = vmatpush3.bf16.msra.mxu1 %v1071_v33 }
 0x399   :  { %1073 = vmatprep.subr.bf16.mxu1 %v1146_v47 }
 0x39a   :  { %v1074_v41 = vpack.c.bf16 %v599_v35, %v598_v36 }
 0x39c   :  { %1075 = vmatpush3.bf16.msra.mxu1 %v1074_v41 }
 0x39d   :  { %1076 = vmatprep.subr.bf16.mxu1 %v1146_v47 }
 0x39f   :  { %1032 = vmatmul.mubr.msk.f32.vlgmr.msra.gmra.mrb[16].mxu1 %vm73_vm0, %v600_v55 }
 0x3a0   :  { %1078 = vmatpush3.bf16.msra.mxu1 %v1077_v42  ;;  %1042 = vmatprep.mubr.msk.f32.mxu1 %vm1147_vm3, %v1148_v43 }
 0x3a1   :  { %1079 = vmatprep.subr.bf16.mxu1 %v1146_v47 }
 0x3a4   :  { %1081 = vmatpush3.bf16.msra.mxu1 %v1080_v46 }
 0x472   :  { %v674_v20 = vpop.f32.mrb[16].mxu1 }
 0x473   :  { %v679_v53 = vmul.f32 %v1119_v52, %v674_v20  ;;  %v1033_v21 = vpop.f32.mrb[17].mxu1 }
 0x475   :  { %1043 = vmatmul.mubr.msk.f32.vlgmr.msra.gmra.mrb[18].mxu1 %vm462_vm2, %v679_v53 }
 0x548   :  { %v764_v56 = vpop.f32.mrb[18].mxu1 }
 0x549   :  { %v765_v57 = vadd.f32 %v764_v56, %v693_v54  ;;  %v1044_v24 = vpop.f32.mrb[19].mxu1 }
 0x54b   :  { %v768_v28 = vmax.f32 %v765_v57, 0.0 }
 0x54d   :  { %1050 = vmatmul.mubr.msk.f32.vlgmr.msra.gmra.mrb[16].mxu0 %vm216_vm1, %v768_v28 }
 0x620   :  { %v841_v58 = vpop.f32.mrb[16].mxu0 }
 0x621   :  { %v842_v59 = vadd.f32 %v841_v58, %v771_v29  ;;  %v1051_v61 = vpop.f32.mrb[17].mxu0 }
 0x623   :  { %845 = vst [vmem:[#allocation2] sm:$0x1] %v842_v59 }
 0x624   :  { %1131 = shalt.err (!%p1128_p4)
}
 0x625   :  { %s1132_s9 = scalar_lea.hbm %s1431_s6, 16 }
 0x626   :  { %p1133_p5 = scmp.ne.s32.totalorder %s1431_s6, %s1132_s9  ;;  %p1136_p6 = scmp.lt.u32.totalorder %s1132_s9, %s1431_s6 }
 0x628   :  { %p1138_p7 = pnand %p1136_p6, %p1133_p5 }
 0x62a   :  { %1141 = shalt.err (!%p1138_p7)
}
 0x62b   :  { %855 = dma.vmem_to_hbm [thread:$0]  %s853_s28, 16, %s1431_s6, [#allocation3]  }
 0x62c   :  { %1142 = dma.done.wait [#allocation3], 16  }
 0x62d   :  { %1143 = vsyncadd [#allocation3], 4294967280 }
 0x62e   :  { %859 = vsyncpa [#allocation3], 1 }

</bundles_post_ra>
